<compile_context>
chip_gen: v7x
topology: tpu7x:2x2x1
jax: 0.10.0
libtpu: 0.0.40
codegen_flags: <defaults>
</compile_context>

<pallas_src>
import jax
import jax.numpy as jnp
from jax.experimental import pallas as pl
from jax.experimental.pallas import tpu as pltpu


# ---------------------------------------------------------------------------
# Pallas kernel: the full hot path (all matmuls / activations / pooling / MLP)
# ---------------------------------------------------------------------------
def gcn_predict_kernel(
    a_ref, x_ref, pa_ref,
    w1_ref, b1_ref, w2_ref, b2_ref,
    wp1_ref, bp1_ref, wp2_ref, bp2_ref,
    out_ref,
):
    # Rows [0:N) of the stacked node axis are the positive graph, [N:2N) the
    # negative graph; a_ref / pa_ref are block-diagonal over the two graphs.

    # layer 1:  A_blk @ (X @ W1) + b1, ReLU     (bf16 operands, f32 accumulation)
    h = jnp.dot(x_ref[...], w1_ref[...], preferred_element_type=jnp.float32)
    h = jnp.dot(a_ref[...], h.astype(a_ref.dtype),
                preferred_element_type=jnp.float32) + b1_ref[...]
    h = jnp.maximum(h, 0.0)                          # elementwise stays f32 (v5e)

    # layer 2 fused with global mean pooling:  (P @ A)_blk @ (H @ W2) + b2
    h = jnp.dot(h.astype(w2_ref.dtype), w2_ref[...],
                preferred_element_type=jnp.float32)
    pooled = jnp.dot(pa_ref[...], h.astype(pa_ref.dtype),
                     preferred_element_type=jnp.float32) + b2_ref[...]

    # concat(pool_pos, pool_neg) along the feature (lane) axis, then the
    # 2-layer MLP head with one dot per layer.
    b = pooled.shape[0] // 2                          # static
    z = jnp.concatenate([pooled[:b, :], pooled[b:, :]], axis=1)     # [B, 2*Cout]
    z = jnp.dot(z.astype(wp1_ref.dtype), wp1_ref[...],
                preferred_element_type=jnp.float32) + bp1_ref[...]
    z = jnp.maximum(z, 0.0)                           # activation between predictors

    out = jnp.dot(z.astype(wp2_ref.dtype), wp2_ref[...],
                  preferred_element_type=jnp.float32) + bp2_ref[...]
    out_ref[...] = out.astype(out_ref.dtype)


def gcn_model_forward(a_pos, x_pos, a_neg, x_neg, p_pool, params):
    (w1, b1, w2, b2, wp1, bp1, wp2, bp2) = params
    n = x_pos.shape[0]
    batch = p_pool.shape[0]
    n_out = wp2.shape[1]
    cdt = jnp.bfloat16  # matmul-operand dtype; every dot accumulates in f32

    # --- algebraic fusion done in the (tiny) JAX wrapper ---------------------
    # 1) fuse pos/neg branches: block-diagonal adjacency over stacked nodes
    a_blk = jnp.zeros((2 * n, 2 * n), jnp.float32)
    a_blk = a_blk.at[:n, :n].set(a_pos).at[n:, n:].set(a_neg)
    x_stack = jnp.concatenate([x_pos, x_neg], axis=0)               # [2N, Cin]
    # 2) fold mean pool into layer-2 aggregation: PA = P @ A
    #    (rows of P sum to 1, so P @ (1 * b2) = b2 and the bias stays exact)
    pa_blk = jnp.zeros((2 * batch, 2 * n), jnp.float32)
    pa_blk = pa_blk.at[:batch, :n].set(p_pool @ a_pos)
    pa_blk = pa_blk.at[batch:, n:].set(p_pool @ a_neg)

    inputs = (
        a_blk.astype(cdt), x_stack.astype(cdt), pa_blk.astype(cdt),
        w1.astype(cdt), b1, w2.astype(cdt), b2,
        wp1.astype(cdt), bp1, wp2.astype(cdt), bp2,
    )

    # advisory cost estimate (tiny kernel; lets XLA schedule around it)
    c_in, c_hid, c_out = w1.shape[0], w1.shape[1], w2.shape[1]
    p_hid = wp1.shape[1]
    flops = 2 * (
        (2 * n) * c_in * c_hid            # X @ W1
        + (2 * n) * (2 * n) * c_hid       # A_blk @ .
        + (2 * n) * c_hid * c_out         # H @ W2
        + (2 * batch) * (2 * n) * c_out   # PA_blk @ .
        + batch * (2 * c_out) * p_hid     # head layer 1
        + batch * p_hid * n_out           # head layer 2
    )
    bytes_accessed = (sum(a.size * a.dtype.itemsize for a in inputs)
                      + batch * n_out * 4)

    vmem = pl.BlockSpec(memory_space=pltpu.MemorySpace.VMEM)
    fn = pl.pallas_call(
        gcn_predict_kernel,
        out_shape=jax.ShapeDtypeStruct((batch, n_out), jnp.float32),
        in_specs=[vmem] * len(inputs),
        out_specs=vmem,
        cost_estimate=pl.CostEstimate(flops=flops, transcendentals=0,
                                      bytes_accessed=bytes_accessed),
    )
    # TODO(synk): if NUM_NODES grows (dense A ~ 2*(2N)^2 bytes in bf16), switch to a
    # grid over the node axis with (512,512) A-tiles, dimension_semantics and a
    # vmem_limit_bytes override (v5e scoped default 16 MiB, v7x physical 64 MiB).
    return fn(*inputs)


# ---------------------------------------------------------------------------
# Glue (plain JAX): build dense normalized adjacency + mean-pool matrix
# ---------------------------------------------------------------------------
def build_gcn_adjacency(edge_index, edge_weight, num_nodes):
    """Dense A_hat = D^-1/2 (A_w + I) D^-1/2 with A_hat[dst, src] = norm weight."""
    src, dst = edge_index[0], edge_index[1]
    loop = jnp.arange(num_nodes, dtype=src.dtype)          # GCNConv self-loops
    src = jnp.concatenate([src, loop])
    dst = jnp.concatenate([dst, loop])
    w = jnp.concatenate([edge_weight, jnp.ones((num_nodes,), edge_weight.dtype)])

    deg = jnp.zeros((num_nodes,), jnp.float32).at[dst].add(w)
    dinv = jnp.where(deg > 0, jax.lax.rsqrt(deg), 0.0)
    norm = dinv[dst] * w * dinv[src]

    return jnp.zeros((num_nodes, num_nodes), jnp.float32).at[dst, src].add(norm)


def build_mean_pool_matrix(batch_vec, num_graphs, num_nodes):
    """P[g, i] = 1/count_g if batch[i] == g else 0  (global_mean_pool as matmul)."""
    one_hot = (batch_vec[None, :] == jnp.arange(num_graphs)[:, None]).astype(jnp.float32)
    counts = jnp.maximum(one_hot.sum(axis=1, keepdims=True), 1.0)
    return one_hot / counts


# ---------------------------------------------------------------------------
# Main
# ---------------------------------------------------------------------------
if __name__ == "__main__":
    # config (small, consistent with the module):
    IN_CH, HID_CH, OUT_CH = 4, 32, 16        # model_params
    NUM_NODES, NUM_EDGES, NUM_GRAPHS = 16, 32, 2
    PRED_HID, NUM_OUT = 32, 3                # predictor hidden, len(loss_weights)
    # add_metadata=False, norm=None, dropout identity (eval), num_pred_layers=2

    key = jax.random.PRNGKey(0)
    keys = jax.random.split(key, 16)

    # graph data (pos / neg)
    x_pos = jax.random.normal(keys[0], (NUM_NODES, IN_CH), jnp.float32)
    x_neg = jax.random.normal(keys[1], (NUM_NODES, IN_CH), jnp.float32)
    ei_pos = jax.random.randint(keys[2], (2, NUM_EDGES), 0, NUM_NODES, jnp.int32)
    ei_neg = jax.random.randint(keys[3], (2, NUM_EDGES), 0, NUM_NODES, jnp.int32)
    ea_pos = jax.random.uniform(keys[4], (NUM_EDGES,), jnp.float32, 0.1, 1.0)
    ea_neg = jax.random.uniform(keys[5], (NUM_EDGES,), jnp.float32, 0.1, 1.0)
    batch_vec = jnp.repeat(jnp.arange(NUM_GRAPHS), NUM_NODES // NUM_GRAPHS)

    # deterministic parameter init (synthetic; matches __init__ shapes)
    def init(k, shape, fan_in):
        return jax.random.normal(k, shape, jnp.float32) / jnp.sqrt(jnp.float32(fan_in))

    w1 = init(keys[6], (IN_CH, HID_CH), IN_CH)                 # GCNConv1 weight
    b1 = init(keys[7], (1, HID_CH), HID_CH)                    # GCNConv1 bias
    w2 = init(keys[8], (HID_CH, OUT_CH), HID_CH)               # GCNConv2 weight
    b2 = init(keys[9], (1, OUT_CH), OUT_CH)                    # GCNConv2 bias
    wp1 = init(keys[10], (2 * OUT_CH, PRED_HID), 2 * OUT_CH)   # projector1
    bp1 = init(keys[11], (1, PRED_HID), PRED_HID)
    wp2 = init(keys[12], (PRED_HID, NUM_OUT), PRED_HID)        # projector2
    bp2 = init(keys[13], (1, NUM_OUT), NUM_OUT)
    params = (w1, b1, w2, b2, wp1, bp1, wp2, bp2)

    # glue: dense normalized adjacency + pooling matrices
    a_pos = build_gcn_adjacency(ei_pos, ea_pos, NUM_NODES)
    a_neg = build_gcn_adjacency(ei_neg, ea_neg, NUM_NODES)
    p_pool = build_mean_pool_matrix(batch_vec, NUM_GRAPHS, NUM_NODES)

    out = gcn_model_forward(a_pos, x_pos, a_neg, x_neg, p_pool, params)
    out = jax.block_until_ready(out)

    # --- sanity checks -----------------------------------------------------
    # (a) tight: same math as the kernel (bf16 operands, f32 accumulation)
    def bdot(a, b):
        return jnp.dot(a.astype(jnp.bfloat16).astype(jnp.float32),
                       b.astype(jnp.bfloat16).astype(jnp.float32))

    def ref_branch_bf16(a, x):
        h = jnp.maximum(bdot(a, bdot(x, w1)) + b1, 0.0)
        return bdot(p_pool @ a, bdot(h, w2)) + b2

    ref_b = jnp.concatenate([ref_branch_bf16(a_pos, x_pos),
                             ref_branch_bf16(a_neg, x_neg)], axis=1)
    ref_b = bdot(jnp.maximum(bdot(ref_b, wp1) + bp1, 0.0), wp2) + bp2

    # (b) loose: original-module f32 math (pool after aggregation, unfused)
    def ref_branch_f32(a, x):
        h = jnp.maximum(a @ (x @ w1) + b1, 0.0)
        h = a @ (h @ w2) + b2
        return p_pool @ h

    ref_f = jnp.concatenate([ref_branch_f32(a_pos, x_pos),
                             ref_branch_f32(a_neg, x_neg)], axis=1)
    ref_f = jnp.maximum(ref_f @ wp1 + bp1, 0.0) @ wp2 + bp2

    assert out.shape == (NUM_GRAPHS, NUM_OUT)
    assert jnp.allclose(out, ref_b, atol=5e-3, rtol=5e-3), "bf16-matched ref mismatch"
    assert jnp.allclose(out, ref_f, atol=1e-1, rtol=1e-1), "f32 ref mismatch"

    # TODO(synk): metadata branch (add_metadata=True) and LayerNorm / dropout-train
    # paths are not exercised in this synthetic eval config.
    print("KERNEL_OK")
</pallas_src>

<mosaic_0001>
module attributes {stable_mosaic.version = 11 : i64} {
  func.func @gcn_predict_kernel(%arg0: memref<32x32xbf16, #tpu.memory_space<vmem>>, %arg1: memref<32x4xbf16, #tpu.memory_space<vmem>>, %arg2: memref<4x32xbf16, #tpu.memory_space<vmem>>, %arg3: memref<4x32xbf16, #tpu.memory_space<vmem>>, %arg4: memref<1x32xf32, #tpu.memory_space<vmem>>, %arg5: memref<32x16xbf16, #tpu.memory_space<vmem>>, %arg6: memref<1x16xf32, #tpu.memory_space<vmem>>, %arg7: memref<32x32xbf16, #tpu.memory_space<vmem>>, %arg8: memref<1x32xf32, #tpu.memory_space<vmem>>, %arg9: memref<32x3xbf16, #tpu.memory_space<vmem>>, %arg10: memref<1x3xf32, #tpu.memory_space<vmem>>, %arg11: memref<2x3xf32, #tpu.memory_space<vmem>>) attributes {dimension_semantics = [], scalar_prefetch = 0 : i64, scratch_operands = 0 : i64, tpu.core_type = #tpu.core_type<tc>} {
    %c0 = arith.constant 0 : index
    %c0_0 = arith.constant 0 : index
    %0 = vector.load %arg1[%c0, %c0_0] : memref<32x4xbf16, #tpu.memory_space<vmem>>, vector<32x4xbf16>
    %c0_1 = arith.constant 0 : index
    %c0_2 = arith.constant 0 : index
    %1 = vector.load %arg3[%c0_1, %c0_2] : memref<4x32xbf16, #tpu.memory_space<vmem>>, vector<4x32xbf16>
    %cst = arith.constant dense<0.000000e+00> : vector<32x32xf32>
    %2 = tpu.matmul %0, %1, %cst {dimension_numbers = #tpu.dot_dimension_numbers<[1], [0], [0], [1], [0, 0, 1, 1], [], []>} : vector<32x4xbf16>, vector<4x32xbf16>, vector<32x32xf32> -> vector<32x32xf32>
    %c0_3 = arith.constant 0 : index
    %c0_4 = arith.constant 0 : index
    %3 = vector.load %arg0[%c0_3, %c0_4] : memref<32x32xbf16, #tpu.memory_space<vmem>>, vector<32x32xbf16>
    %4 = arith.truncf %2 : vector<32x32xf32> to vector<32x32xbf16>
    %cst_5 = arith.constant dense<0.000000e+00> : vector<32x32xf32>
    %5 = tpu.matmul %3, %4, %cst_5 {dimension_numbers = #tpu.dot_dimension_numbers<[1], [0], [0], [1], [0, 0, 1, 1], [], []>} : vector<32x32xbf16>, vector<32x32xbf16>, vector<32x32xf32> -> vector<32x32xf32>
    %c0_6 = arith.constant 0 : index
    %c0_7 = arith.constant 0 : index
    %6 = vector.load %arg4[%c0_6, %c0_7] : memref<1x32xf32, #tpu.memory_space<vmem>>, vector<1x32xf32>
    %7 = vector.broadcast %6 : vector<1x32xf32> to vector<32x32xf32>
    %8 = arith.addf %5, %7 : vector<32x32xf32>
    %cst_8 = arith.constant 0.000000e+00 : f32
    %9 = vector.broadcast %cst_8 : f32 to vector<32x32xf32>
    %10 = arith.maximumf %8, %9 : vector<32x32xf32>
    %11 = arith.truncf %10 : vector<32x32xf32> to vector<32x32xbf16>
    %c0_9 = arith.constant 0 : index
    %c0_10 = arith.constant 0 : index
    %12 = vector.load %arg5[%c0_9, %c0_10] : memref<32x16xbf16, #tpu.memory_space<vmem>>, vector<32x16xbf16>
    %cst_11 = arith.constant dense<0.000000e+00> : vector<32x16xf32>
    %13 = tpu.matmul %11, %12, %cst_11 {dimension_numbers = #tpu.dot_dimension_numbers<[1], [0], [0], [1], [0, 0, 1, 1], [], []>} : vector<32x32xbf16>, vector<32x16xbf16>, vector<32x16xf32> -> vector<32x16xf32>
    %c0_12 = arith.constant 0 : index
    %c0_13 = arith.constant 0 : index
    %14 = vector.load %arg2[%c0_12, %c0_13] : memref<4x32xbf16, #tpu.memory_space<vmem>>, vector<4x32xbf16>
    %15 = arith.truncf %13 : vector<32x16xf32> to vector<32x16xbf16>
    %cst_14 = arith.constant dense<0.000000e+00> : vector<4x16xf32>
    %16 = tpu.matmul %14, %15, %cst_14 {dimension_numbers = #tpu.dot_dimension_numbers<[1], [0], [0], [1], [0, 0, 1, 1], [], []>} : vector<4x32xbf16>, vector<32x16xbf16>, vector<4x16xf32> -> vector<4x16xf32>
    %c0_15 = arith.constant 0 : index
    %c0_16 = arith.constant 0 : index
    %17 = vector.load %arg6[%c0_15, %c0_16] : memref<1x16xf32, #tpu.memory_space<vmem>>, vector<1x16xf32>
    %18 = vector.broadcast %17 : vector<1x16xf32> to vector<4x16xf32>
    %19 = arith.addf %16, %18 : vector<4x16xf32>
    %20 = vector.extract_strided_slice %19 {offsets = [0, 0], sizes = [2, 16], strides = [1, 1]} : vector<4x16xf32> to vector<2x16xf32>
    %21 = vector.extract_strided_slice %19 {offsets = [2, 0], sizes = [2, 16], strides = [1, 1]} : vector<4x16xf32> to vector<2x16xf32>
    %22 = tpu.concatenate %20, %21 in 1 : vector<2x16xf32>, vector<2x16xf32> -> vector<2x32xf32>
    %23 = arith.truncf %22 : vector<2x32xf32> to vector<2x32xbf16>
    %c0_17 = arith.constant 0 : index
    %c0_18 = arith.constant 0 : index
    %24 = vector.load %arg7[%c0_17, %c0_18] : memref<32x32xbf16, #tpu.memory_space<vmem>>, vector<32x32xbf16>
    %cst_19 = arith.constant dense<0.000000e+00> : vector<2x32xf32>
    %25 = tpu.matmul %23, %24, %cst_19 {dimension_numbers = #tpu.dot_dimension_numbers<[1], [0], [0], [1], [0, 0, 1, 1], [], []>} : vector<2x32xbf16>, vector<32x32xbf16>, vector<2x32xf32> -> vector<2x32xf32>
    %c0_20 = arith.constant 0 : index
    %c0_21 = arith.constant 0 : index
    %26 = vector.load %arg8[%c0_20, %c0_21] : memref<1x32xf32, #tpu.memory_space<vmem>>, vector<1x32xf32>
    %27 = vector.broadcast %26 : vector<1x32xf32> to vector<2x32xf32>
    %28 = arith.addf %25, %27 : vector<2x32xf32>
    %cst_22 = arith.constant 0.000000e+00 : f32
    %29 = vector.broadcast %cst_22 : f32 to vector<2x32xf32>
    %30 = arith.maximumf %28, %29 : vector<2x32xf32>
    %31 = arith.truncf %30 : vector<2x32xf32> to vector<2x32xbf16>
    %c0_23 = arith.constant 0 : index
    %c0_24 = arith.constant 0 : index
    %32 = vector.load %arg9[%c0_23, %c0_24] : memref<32x3xbf16, #tpu.memory_space<vmem>>, vector<32x3xbf16>
    %cst_25 = arith.constant dense<0.000000e+00> : vector<2x3xf32>
    %33 = tpu.matmul %31, %32, %cst_25 {dimension_numbers = #tpu.dot_dimension_numbers<[1], [0], [0], [1], [0, 0, 1, 1], [], []>} : vector<2x32xbf16>, vector<32x3xbf16>, vector<2x3xf32> -> vector<2x3xf32>
    %c0_26 = arith.constant 0 : index
    %c0_27 = arith.constant 0 : index
    %34 = vector.load %arg10[%c0_26, %c0_27] : memref<1x3xf32, #tpu.memory_space<vmem>>, vector<1x3xf32>
    %35 = vector.broadcast %34 : vector<1x3xf32> to vector<2x3xf32>
    %36 = arith.addf %33, %35 : vector<2x3xf32>
    %c0_28 = arith.constant 0 : index
    %c0_29 = arith.constant 0 : index
    %37 = vector.load %arg11[%c0_28, %c0_29] : memref<2x3xf32, #tpu.memory_space<vmem>>, vector<2x3xf32>
    tpu.vector_store %arg11[%c0_28, %c0_29], %36 {strides = array<i32>} : memref<2x3xf32, #tpu.memory_space<vmem>>, vector<2x3xf32>,
    return
  }
}

</mosaic_0001>

<bundles_post_ra>
// kernel: tpu_custom_call.1
= control target key start
LH: loop header
LB: loop body
LE: loop exit
PB: predicated region body
PF: predicated region fallthrough
CT: control target
= control target key end

     0   :  { %vm62_vm0 = vcmask 1041408   ;;  %vm55_vm1 = vcmask 31744   ;;  %s741_s0 = inlined_call_operand.vmem [shape: bf16[32,32], index: 0, kind: input, shape index: {}]   ;;  %s742_s1 = inlined_call_operand.vmem [shape: bf16[32,4], index: 1, kind: input, shape index: {}]   ;;  %s743_s2 = inlined_call_operand.vmem [shape: bf16[4,32], index: 2, kind: input, shape index: {}]   ;;  %s744_s3 = inlined_call_operand.vmem [shape: bf16[4,32], index: 3, kind: input, shape index: {}]   ;;  %s745_s4 = inlined_call_operand.vmem [shape: f32[1,32], index: 4, kind: input, shape index: {}]   ;;  %s746_s5 = inlined_call_operand.vmem [shape: bf16[32,16], index: 5, kind: input, shape index: {}]   ;;  %s747_s6 = inlined_call_operand.vmem [shape: f32[1,16], index: 6, kind: input, shape index: {}]   ;;  %s748_s7 = inlined_call_operand.vmem [shape: bf16[32,32], index: 7, kind: input, shape index: {}]   ;;  %s749_s8 = inlined_call_operand.vmem [shape: f32[1,32], index: 8, kind: input, shape index: {}]   ;;  %s750_s9 = inlined_call_operand.vmem [shape: bf16[32,3], index: 9, kind: input, shape index: {}]   ;;  %s751_s10 = inlined_call_operand.vmem [shape: f32[1,3], index: 10, kind: input, shape index: {}]   ;;  %s752_s11 = inlined_call_operand.hbm [shape: f32[2,3], index: 11, kind: output, shape index: {}]  }
   0x1   :  { %v44_v0 = vld [vmem:[%s744_s3] sm:$0x3]  ;;  %v577_v3 = vld [vmem:[%s742_s1 + $0x8] sm:$0xff]  }
   0x2   :  { %v576_v1 = vld [vmem:[%s742_s1] sm:$0xff]   ;;  %571 = vmatprep.subr.msk.bf16.mxu0 %vm62_vm0, %v44_v0  ;;  %v64_v2 = vsel %vm62_vm0, %v44_v0, 0 }
   0x3   :  { %526 = vmatpush3.bf16.msra.mxu0 %v64_v2  ;;  %527 = vmatprep.mubr.msk.bf16.mxu0 %vm55_vm1, %v576_v1 }
   0x6   :  { %528 = vmatmul.mubr.msk.bf16.vlgmr.msra.gmra.mrb[0].mxu0 %vm55_vm1, %v577_v3 }
   0x7   :  { %16 = vsyncpa [#allocation3], 0  ;;  %v578_v4 = vld [vmem:[%s741_s0] sm:$0xff]   ;;  %vm138_vm2 = vcmask 261120   ;;  %v579_v11 = vld [vmem:[%s741_s0 + $0x8] sm:$0xff]   ;;  %v610_v29 = vmov 0.0  }
   0x8   :  { %535 = vmatprep.mubr.msk.bf16.mxu1 %vm138_vm2, %v578_v4  ;;  %v580_v12 = vld [vmem:[%s746_s5] sm:$0xff]   ;;  %v581_v13 = vld [vmem:[%s746_s5 + $0x8] sm:$0xff]   ;;  %vm611_vm3 = vmmov 0   ;;  %vm329_vm4 = vcmask 130048   ;;  %s613_s23 = smov [#allocation2]   ;;  %vm466_vm5 = vcmask 17408  }
   0x9   :  { %539 = vmatprep.subr.bf16.mxu0 %v580_v12  ;;  %v486_v14 = vld [vmem:[%s745_s4] ss:$0 sm:$0xff]  ;;  %v583_v38 = vld [vmem:[%s748_s7 + $0x8] sm:$0xff]  }
   0xa   :  { %540 = vmatpush3.bf16.msra.mxu0 %v580_v12  ;;  %v271_v36 = vld [vmem:[%s743_s2] sm:$0x3]  ;;  %s612_s2 = smov 16   ;;  %v585_v50 = vld [vmem:[%s750_s9 + $0x8] sm:$0xff]  }
   0xb   :  { %541 = vmatprep.subr.bf16.mxu0 %v581_v13  ;;  %v582_v37 = vld [vmem:[%s748_s7] sm:$0xff]  }
   0xc   :  { %v495_v39 = vld [vmem:[%s747_s6] ss:$0 sm:$0xff] }
   0xd   :  { %v584_v49 = vld [vmem:[%s750_s9] sm:$0xff]   ;;  %s474_s9 = sshll.u32 %s613_s23, 4  ;;  %s475_s9 = int_to_ptr.vmem [resolvable:$true] %s474_s9 }
   0xe   :  { %542 = vmatpush3.bf16.msra.mxu0 %v581_v13  ;;  %v497_v51 = vld [vmem:[%s749_s8] ss:$0 sm:$0xff]  ;;  %s586_s8 = scalar_lea.vmem %s475_s9, 32  ;;  %p591_p1 = scmp.lt.s32.totalorder %s475_s9, %s475_s9 }
   0xf   :  { %555 = vmatprep.subr.bf16.mxu0 %v610_v29  ;;  %v501_v59 = vld [vmem:[%s751_s10] ss:$0 sm:$0xff]  ;;  %p587_p0 = scmp.ne.s32.totalorder %s475_s9, %s586_s8  ;;  %p592_p2 = scmp.lt.s32.totalorder %s586_s8, %s586_s8 }
  0x11   :  { %p593_p3 = por %p592_p2, %p591_p1 }
  0x13   :  { %p594_p4 = pnand %p593_p3, %p587_p0 }
  0xd9   :  { %v529_v5 = vpop.f32.mrb[0].mxu0 }
  0xda   :  { %v100_v6 = vpop.f32.mrb[1].mxu0 }
  0xdb   :  { %v530_v7 = vpop.f32.mrb[2].mxu0 }
  0xdc   :  { %v120_v8 = vpack.c.bf16 %v530_v7, %v529_v5  ;;  %v103_v9 = vpop.f32.mrb[3].mxu0 }
  0xdd   :  { %v119_v10 = vpack.c.bf16 %v103_v9, %v100_v6 }
  0xdf   :  { %531 = vmatprep.subr.bf16.mxu1 %v119_v10 }
  0xe0   :  { %532 = vmatpush3.bf16.msra.mxu1 %v119_v10 }
  0xe1   :  { %533 = vmatprep.subr.bf16.mxu1 %v120_v8 }
  0xe4   :  { %534 = vmatpush3.bf16.msra.mxu1 %v120_v8 }
  0xe5   :  { %547 = vmatprep.subr.bf16.mxu1 %v610_v29 }
  0xe7   :  { %536 = vmatmul.mubr.msk.bf16.vlgmr.msra.gmra.mrb[0].mxu1 %vm138_vm2, %v579_v11 }
  0xe8   :  { %551 = vmatprep.mubr.msk.bf16.mxu1 %vm611_vm3, %v610_v29 }
 0x1ba   :  { %v537_v15 = vpop.f32.mrb[0].mxu1 }
 0x1bb   :  { %v188_v16 = vadd.f32 %v537_v15, %v486_v14  ;;  %v179_v17 = vpop.f32.mrb[1].mxu1 }
 0x1bc   :  { %v180_v18 = vadd.f32 %v486_v14, %v179_v17  ;;  %v538_v19 = vpop.f32.mrb[2].mxu1 }
 0x1bd   :  { %v191_v20 = vadd.f32 %v538_v19, %v486_v14  ;;  %v182_v21 = vpop.f32.mrb[3].mxu1  ;;  %v196_v23 = vmax.f32 %v188_v16, 0.0 }
 0x1be   :  { %v183_v22 = vadd.f32 %v486_v14, %v182_v21  ;;  %v194_v25 = vmax.f32 %v180_v18, 0.0 }
 0x1bf   :  { %v197_v24 = vmax.f32 %v191_v20, 0.0 }
 0x1c0   :  { %v195_v26 = vmax.f32 %v183_v22, 0.0 }
 0x1c1   :  { %v199_v27 = vpack.c.bf16 %v197_v24, %v196_v23 }
 0x1c2   :  { %v198_v28 = vpack.c.bf16 %v195_v26, %v194_v25 }
 0x1c4   :  { %543 = vmatprep.mubr.msk.bf16.mxu0 %vm138_vm2, %v198_v28 }
 0x1c5   :  { %544 = vmatmul.mubr.msk.bf16.vlgmr.msra.gmra.mrb[4].mxu0 %vm138_vm2, %v199_v27 }
 0x1c6   :  { %559 = vmatprep.mubr.msk.bf16.mxu0 %vm611_vm3, %v610_v29  ;;  %556 = vmatpush3.bf16.msra.mxu0 %v582_v37 }
 0x1c7   :  { %557 = vmatprep.subr.bf16.mxu0 %v610_v29 }
 0x1ca   :  { %558 = vmatpush3.bf16.msra.mxu0 %v583_v38 }
 0x298   :  { %v545_v30 = vpop.f32.mrb[4].mxu0 }
 0x299   :  { %v256_v31 = vpop.f32.mrb[5].mxu0 }
 0x29a   :  { %v546_v32 = vpop.f32.mrb[6].mxu0 }
 0x29b   :  { %v273_v33 = vpack.c.bf16 %v546_v32, %v545_v30  ;;  %v259_v34 = vpop.f32.mrb[7].mxu0 }
 0x29c   :  { %v272_v35 = vpack.c.bf16 %v259_v34, %v256_v31 }
 0x29e   :  { %548 = vmatpush3.bf16.msra.mxu1 %v272_v35 }
 0x29f   :  { %549 = vmatprep.subr.bf16.mxu1 %v610_v29 }
 0x2a2   :  { %550 = vmatpush3.bf16.msra.mxu1 %v273_v33 }
 0x2a3   :  { %563 = vmatprep.subr.bf16.mxu1 %v610_v29 }
 0x2a5   :  { %552 = vmatmul.mubr.msk.bf16.vlgmr.msra.gmra.mrb[4].mxu1 %vm138_vm2, %v271_v36 }
 0x2a6   :  { %567 = vmatprep.mubr.msk.bf16.mxu1 %vm611_vm3, %v610_v29  ;;  %564 = vmatpush3.bf16.msra.mxu1 %v584_v49 }
 0x2a7   :  { %565 = vmatprep.subr.bf16.mxu1 %v610_v29 }
 0x2aa   :  { %566 = vmatpush3.bf16.msra.mxu1 %v585_v50 }
 0x378   :  { %v318_v40 = vpop.f32.mrb[4].mxu1 }
 0x379   :  { %v319_v41 = vadd.f32 %v495_v39, %v318_v40  ;;  %v553_v42 = vpop.f32.mrb[5].mxu1 }
 0x37a   :  { %v321_v43 = vpop.f32.mrb[6].mxu1 }
 0x37b   :  { %v554_v44 = vpop.f32.mrb[7].mxu1  ;;  %v325_v45 = vrot.slane %v319_v41, 2 }
 0x37d   :  { %326 = vrot.lane.b32.xlu0 %v325_v45, %s612_s2 }
 0x3ef   :  { %v327_v46 = vpop.permute.xlu0 %326 }
 0x3f0   :  { %v330_v47 = vsel %vm329_vm4, %v319_v41, %v327_v46 }
 0x3f1   :  { %v331_v48 = vpack.c.bf16 %v330_v47, %v330_v47 }
 0x3f3   :  { %560 = vmatmul.mubr.msk.bf16.vlgmr.msra.gmra.mrb[8].mxu0 %vm138_vm2, %v331_v48 }
 0x4c6   :  { %v392_v52 = vpop.f32.mrb[8].mxu0 }
 0x4c7   :  { %v393_v53 = vadd.f32 %v497_v51, %v392_v52  ;;  %v561_v54 = vpop.f32.mrb[9].mxu0 }
 0x4c8   :  { %v395_v55 = vpop.f32.mrb[10].mxu0 }
 0x4c9   :  { %v398_v56 = vmax.f32 %v393_v53, 0.0  ;;  %v562_v57 = vpop.f32.mrb[11].mxu0 }
 0x4cb   :  { %v399_v58 = vpack.c.bf16 %v398_v56, %v398_v56 }
 0x4cd   :  { %568 = vmatmul.mubr.msk.bf16.vlgmr.msra.gmra.mrb[8].mxu1 %vm138_vm2, %v399_v58 }
 0x5a0   :  { %v460_v60 = vpop.f32.mrb[8].mxu1 }
 0x5a1   :  { %v461_v61 = vadd.f32 %v501_v59, %v460_v60  ;;  %v569_v62 = vpop.f32.mrb[9].mxu1 }
 0x5a2   :  { %v463_v63 = vpop.f32.mrb[10].mxu1 }
 0x5a3   :  { %v570_v0 = vpop.f32.mrb[11].mxu1  ;;  %467 = vst.msk [vmem:[#allocation2] sm:$0x3] %vm466_vm5, %v461_v61 }
 0x5a4   :  { %597 = shalt.err (!%p594_p4)
}
 0x5a5   :  { %s598_s10 = scalar_lea.hbm %s752_s11, 32 }
 0x5a6   :  { %p599_p5 = scmp.ne.s32.totalorder %s752_s11, %s598_s10  ;;  %p602_p6 = scmp.lt.u32.totalorder %s598_s10, %s752_s11 }
 0x5a8   :  { %p604_p7 = pnand %p602_p6, %p599_p5 }
 0x5aa   :  { %607 = shalt.err (!%p604_p7)
}
 0x5ab   :  { %477 = dma.vmem_to_hbm [thread:$0]  %s475_s9, 32, %s752_s11, [#allocation3]  }
 0x5ac   :  { %608 = dma.done.wait [#allocation3], 32  }
 0x5ad   :  { %609 = vsyncadd [#allocation3], 4294967264 }
 0x5ae   :  { %481 = vsyncpa [#allocation3], 1 }

</bundles_post_ra>
